<compile_context>
chip_gen: v7x
topology: tpu7x:2x2x1
jax: 0.10.0
libtpu: 0.0.40
codegen_flags: <defaults>
</compile_context>

<pallas_src>
import functools

import jax
import jax.numpy as jnp
from jax import lax
from jax.experimental import pallas as pl
from jax.experimental.pallas import tpu as pltpu


VMEM_LIMIT = 48 * 1024 * 1024  # <= v7x 64 MiB/TC physical; plenty for 512-tiles.


def _round_up(x, m):
    return ((x + m - 1) // m) * m


def _pick_node_tile(np_, target=512):
    """Largest multiple-of-128 divisor of np_ that is <= target; prefer >= 2 row
    tiles so the 'parallel' axis can shard across both TensorCores (v7x)."""
    units = np_ // 128
    divs = [k for k in range(1, units + 1) if units % k == 0 and 128 * k <= target]
    best = max(divs)
    if 128 * best == np_ and units > 1:
        smaller = [k for k in divs if 128 * k < np_]
        if smaller:
            best = max(smaller)
    return 128 * best


def _pick_reduce_tile(np_, tm, itemsize, budget_bytes=24 * 1024 * 1024):
    """Wide column tile for the mem-bound degree row-sum over A."""
    units = np_ // 128
    cap = max(128, budget_bytes // (3 * tm * itemsize))
    divs = [k for k in range(1, units + 1) if units % k == 0 and 128 * k <= cap]
    return 128 * max(divs) if divs else 128


# ----------------------------------------------------------------------------
# Kernel 1: per-node scale  d_is = rsqrt(row_degree), 0 where degree == 0
# ----------------------------------------------------------------------------
def _degree_kernel(a_ref, dis_ref, acc_ref):
    k = pl.program_id(1)

    @pl.when(k == 0)
    def _():
        acc_ref[...] = jnp.zeros_like(acc_ref)

    # Row sums (matches torch.sparse.sum(A, dim=1)); f32 accumulate is exact here.
    acc_ref[...] += jnp.sum(a_ref[...].astype(jnp.float32), axis=1, keepdims=True)

    @pl.when(k == pl.num_programs(1) - 1)
    def _():
        d = acc_ref[...]
        dis_ref[...] = jnp.where(d > 0.0, lax.rsqrt(d), 0.0)


def degree_inv_sqrt(a_pad, tm, tk):
    np_ = a_pad.shape[0]
    grid = (np_ // tm, np_ // tk)
    return pl.pallas_call(
        _degree_kernel,
        out_shape=jax.ShapeDtypeStruct((np_, 1), jnp.float32),
        grid_spec=pltpu.PrefetchScalarGridSpec(
            num_scalar_prefetch=0,
            grid=grid,
            in_specs=[pl.BlockSpec((tm, tk), lambda i, k: (i, k))],
            out_specs=pl.BlockSpec((tm, 1), lambda i, k: (i, 0)),
            scratch_shapes=[pltpu.VMEM((tm, 1), jnp.float32)],
        ),
        compiler_params=pltpu.CompilerParams(
            dimension_semantics=("parallel", "arbitrary"),
            vmem_limit_bytes=VMEM_LIMIT,
        ),
        cost_estimate=pl.CostEstimate(
            flops=int(np_) * int(np_),
            transcendentals=int(np_),
            bytes_accessed=a_pad.size * a_pad.dtype.itemsize + np_ * 4,
        ),
    )(a_pad)


# ----------------------------------------------------------------------------
# Kernel 2: row scale  XS = d_is * X   (done once, hoisted out of the agg loop)
# ----------------------------------------------------------------------------
def _scale_rows_kernel(x_ref, dis_ref, o_ref):
    o_ref[...] = (dis_ref[...] * x_ref[...].astype(jnp.float32)).astype(o_ref.dtype)


def _scale_rows(x_pad, dis, tm, mm_dtype):
    np_, finp = x_pad.shape
    return pl.pallas_call(
        _scale_rows_kernel,
        out_shape=jax.ShapeDtypeStruct((np_, finp), mm_dtype),
        grid_spec=pltpu.PrefetchScalarGridSpec(
            num_scalar_prefetch=0,
            grid=(np_ // tm,),
            in_specs=[
                pl.BlockSpec((tm, finp), lambda i: (i, 0)),
                pl.BlockSpec((tm, 1), lambda i: (i, 0)),
            ],
            out_specs=pl.BlockSpec((tm, finp), lambda i: (i, 0)),
        ),
        compiler_params=pltpu.CompilerParams(
            dimension_semantics=("parallel",),
            vmem_limit_bytes=VMEM_LIMIT,
        ),
    )(x_pad, dis)


# ----------------------------------------------------------------------------
# Kernel 3 ("W-first" pre-mix):  Y = d_is * (X @ W^T)     shape [NP, FoutP]
# ----------------------------------------------------------------------------
def _mix_kernel(x_ref, wt_ref, dis_ref, y_ref):
    xw = jnp.dot(x_ref[...], wt_ref[...], preferred_element_type=jnp.float32)
    y_ref[...] = (dis_ref[...] * xw).astype(y_ref.dtype)


def _premix(x_pad, wt_pad, dis, tm, mm_dtype):
    np_, finp = x_pad.shape
    foutp = wt_pad.shape[1]
    return pl.pallas_call(
        _mix_kernel,
        out_shape=jax.ShapeDtypeStruct((np_, foutp), mm_dtype),
        grid_spec=pltpu.PrefetchScalarGridSpec(
            num_scalar_prefetch=0,
            grid=(np_ // tm,),
            in_specs=[
                pl.BlockSpec((tm, finp), lambda i: (i, 0)),      # X tile
                pl.BlockSpec((finp, foutp), lambda i: (0, 0)),   # W^T resident
                pl.BlockSpec((tm, 1), lambda i: (i, 0)),         # d_is rows
            ],
            out_specs=pl.BlockSpec((tm, foutp), lambda i: (i, 0)),
        ),
        compiler_params=pltpu.CompilerParams(
            dimension_semantics=("parallel",),
            vmem_limit_bytes=VMEM_LIMIT,
        ),
        cost_estimate=pl.CostEstimate(
            flops=2 * int(np_) * int(finp) * int(foutp),
            transcendentals=0,
            bytes_accessed=x_pad.size * x_pad.dtype.itemsize
            + wt_pad.size * wt_pad.dtype.itemsize
            + np_ * 4
            + np_ * foutp * jnp.dtype(mm_dtype).itemsize,
        ),
    )(x_pad, wt_pad, dis)


# ----------------------------------------------------------------------------
# Kernel 4a ("W-first" aggregate):  out = relu?( d_is * (A @ Y) )
# ----------------------------------------------------------------------------
def _agg_wfirst_kernel(a_ref, y_ref, dis_ref, o_ref, acc_ref, *, apply_relu, mm_dtype):
    k = pl.program_id(1)

    @pl.when(k == 0)
    def _():
        acc_ref[...] = jnp.zeros_like(acc_ref)

    a = a_ref[...].astype(jnp.float32).astype(mm_dtype)   # int8 -> MXU dtype (exact)
    acc_ref[...] += jnp.dot(a, y_ref[...], preferred_element_type=jnp.float32)

    @pl.when(k == pl.num_programs(1) - 1)
    def _():
        out = dis_ref[...] * acc_ref[...]
        if apply_relu:
            out = jnp.maximum(out, 0.0)
        o_ref[...] = out.astype(o_ref.dtype)


# ----------------------------------------------------------------------------
# Kernel 4b ("A-first" aggregate):  out = relu?( (d_is * (A @ XS)) @ W^T )
#   XS = d_is * X is pre-scaled once outside this kernel.
# ----------------------------------------------------------------------------
def _agg_afirst_kernel(a_ref, xs_ref, dis_ref, wt_ref, o_ref, acc_ref, *,
                       apply_relu, mm_dtype):
    k = pl.program_id(1)

    @pl.when(k == 0)
    def _():
        acc_ref[...] = jnp.zeros_like(acc_ref)

    a = a_ref[...].astype(jnp.float32).astype(mm_dtype)   # int8 -> MXU dtype (exact)
    acc_ref[...] += jnp.dot(a, xs_ref[...], preferred_element_type=jnp.float32)

    @pl.when(k == pl.num_programs(1) - 1)
    def _():
        z = (dis_ref[...] * acc_ref[...]).astype(mm_dtype)
        out = jnp.dot(z, wt_ref[...], preferred_element_type=jnp.float32)
        if apply_relu:
            out = jnp.maximum(out, 0.0)
        o_ref[...] = out.astype(o_ref.dtype)


# ----------------------------------------------------------------------------
# One GCN layer (matmul association picked from the unpadded Fin/Fout).
# ----------------------------------------------------------------------------
def gcn_layer(a_pad, dis, x_pad, wt_pad, *, f_in, f_out, apply_relu, is_last,
              tm, tk, mm_dtype):
    np_ = a_pad.shape[0]
    finp, foutp = wt_pad.shape
    out_dtype = jnp.float32 if is_last else mm_dtype
    grid = (np_ // tm, np_ // tk)
    cparams = pltpu.CompilerParams(
        dimension_semantics=("parallel", "arbitrary"),
        vmem_limit_bytes=VMEM_LIMIT,
    )
    a_bytes = a_pad.size * a_pad.dtype.itemsize
    out_bytes = np_ * foutp * jnp.dtype(out_dtype).itemsize

    if f_out < f_in:
        # ---- W-first: Y = d_is*(X @ W^T), then out = relu?(d_is * (A @ Y)) ----
        y = _premix(x_pad, wt_pad, dis, tm, mm_dtype)        # [NP, FoutP]
        kernel = functools.partial(_agg_wfirst_kernel,
                                   apply_relu=apply_relu, mm_dtype=mm_dtype)
        return pl.pallas_call(
            kernel,
            out_shape=jax.ShapeDtypeStruct((np_, foutp), out_dtype),
            grid_spec=pltpu.PrefetchScalarGridSpec(
                num_scalar_prefetch=0,
                grid=grid,
                in_specs=[
                    pl.BlockSpec((tm, tk), lambda i, k: (i, k)),      # A (int8)
                    pl.BlockSpec((tk, foutp), lambda i, k: (k, 0)),   # Y
                    pl.BlockSpec((tm, 1), lambda i, k: (i, 0)),       # d_is rows
                ],
                out_specs=pl.BlockSpec((tm, foutp), lambda i, k: (i, 0)),
                scratch_shapes=[pltpu.VMEM((tm, foutp), jnp.float32)],
            ),
            compiler_params=cparams,
            cost_estimate=pl.CostEstimate(
                flops=2 * int(np_) * int(np_) * int(foutp),
                transcendentals=0,
                bytes_accessed=a_bytes + y.size * y.dtype.itemsize
                + np_ * 4 + out_bytes,
            ),
        )(a_pad, y, dis)
    else:
        # ---- A-first: out = relu?((d_is * (A @ (d_is*X))) @ W^T) ----
        xs = _scale_rows(x_pad, dis, tm, mm_dtype)           # [NP, FinP], scaled once
        kernel = functools.partial(_agg_afirst_kernel,
                                   apply_relu=apply_relu, mm_dtype=mm_dtype)
        return pl.pallas_call(
            kernel,
            out_shape=jax.ShapeDtypeStruct((np_, foutp), out_dtype),
            grid_spec=pltpu.PrefetchScalarGridSpec(
                num_scalar_prefetch=0,
                grid=grid,
                in_specs=[
                    pl.BlockSpec((tm, tk), lambda i, k: (i, k)),      # A (int8)
                    pl.BlockSpec((tk, finp), lambda i, k: (k, 0)),    # d_is * X
                    pl.BlockSpec((tm, 1), lambda i, k: (i, 0)),       # d_is (M rows)
                    pl.BlockSpec((finp, foutp), lambda i, k: (0, 0)), # W^T resident
                ],
                out_specs=pl.BlockSpec((tm, foutp), lambda i, k: (i, 0)),
                # FIXED: accumulator holds A @ XS, which is (tm, FinP).
                scratch_shapes=[pltpu.VMEM((tm, finp), jnp.float32)],
            ),
            compiler_params=cparams,
            cost_estimate=pl.CostEstimate(
                flops=2 * int(np_) * int(np_) * int(finp)
                + 2 * int(np_) * int(finp) * int(foutp),
                transcendentals=0,
                bytes_accessed=a_bytes + xs.size * xs.dtype.itemsize
                + wt_pad.size * wt_pad.dtype.itemsize + np_ * 4 + out_bytes,
            ),
        )(a_pad, xs, dis, wt_pad)


# ----------------------------------------------------------------------------
# Full GCN forward.
# weights[i] is PyTorch nn.Linear layout [out_features, in_features], bias-free.
# ----------------------------------------------------------------------------
def gcn_forward(x, a, weights, *, node_tile_target=512, mm_dtype=jnp.bfloat16,
                assume_binary_adjacency=True):
    n, f_in0 = x.shape
    np_ = _round_up(n, 128)
    tm = _pick_node_tile(np_, node_tile_target)
    tk = tm
    finp0 = _round_up(f_in0, 128)

    # A stored in HBM as int8 (exact for a 0/1 adjacency with self-loops); padded
    # directly in the storage dtype so no f32 N^2 intermediate is materialized.
    a_store_dtype = jnp.int8 if assume_binary_adjacency else mm_dtype
    a_pad = jnp.pad(a.astype(a_store_dtype), ((0, np_ - n), (0, np_ - n)))
    h = jnp.pad(x, ((0, np_ - n), (0, finp0 - f_in0))).astype(mm_dtype)

    tk_deg = _pick_reduce_tile(np_, tm, jnp.dtype(a_store_dtype).itemsize)
    dis = degree_inv_sqrt(a_pad, tm, tk_deg)   # [NP, 1] f32

    n_layers = len(weights)
    for idx, w in enumerate(weights):
        f_out, f_in = w.shape
        finp = _round_up(f_in, 128)
        foutp = _round_up(f_out, 128)
        wt_pad = jnp.pad(w.T, ((0, finp - f_in), (0, foutp - f_out))).astype(mm_dtype)
        is_last = idx == n_layers - 1
        h = gcn_layer(a_pad, dis, h, wt_pad,
                      f_in=f_in, f_out=f_out,
                      apply_relu=not is_last, is_last=is_last,
                      tm=tm, tk=tk, mm_dtype=mm_dtype)

    return h[:n, :weights[-1].shape[0]]


# ----------------------------------------------------------------------------
# Pure-JAX reference (for in-script correctness sanity check).
# ----------------------------------------------------------------------------
def gcn_reference(x, a, weights):
    d = jnp.sum(a, axis=1)
    dis = jnp.where(d > 0.0, 1.0 / jnp.sqrt(d), 0.0)
    a_hat = dis[:, None] * a * dis[None, :]
    h = x
    for idx, w in enumerate(weights):
        h = (a_hat @ h) @ w.T
        if idx != len(weights) - 1:
            h = jnp.maximum(h, 0.0)
    return h


# ----------------------------------------------------------------------------
# Deterministic parameter init (PyTorch nn.Linear default: U(-1/sqrt(fan_in), ..))
# ----------------------------------------------------------------------------
def init_gcn_params(key, n_features, n_classes, hidden_dimensions):
    dims_in = [n_features] + hidden_dimensions
    dims_out = hidden_dimensions + [n_classes]
    weights = []
    for fin, fout in zip(dims_in, dims_out):
        key, sub = jax.random.split(key)
        bound = 1.0 / jnp.sqrt(fin)
        w = jax.random.uniform(sub, (fout, fin), jnp.float32, -bound, bound)
        weights.append(w)
    return weights


if __name__ == "__main__":
    key = jax.random.PRNGKey(0)

    # Small synthetic graph.  N=200 pads to 256; the tile picker chooses 128-tiles
    # (>= 2 row tiles), giving a 2x2 aggregation grid that exercises the
    # accumulate/finalize path.  hidden=200 makes padded Fin (128) != padded Fout
    # (256) on layer 0 (A-first) and the reverse on layer 1 (W-first), exercising
    # both matmul associations and the fixed accumulator shape.
    N = 200
    n_features = 32
    hidden_dimensions = [200]
    n_classes = 8

    k_x, k_a, k_w = jax.random.split(key, 3)

    # Node features
    X = jax.random.normal(k_x, (N, n_features), jnp.float32)

    # Random symmetric binary adjacency + self-loops (dense representation of
    # the sparse FloatTensor the PyTorch module expects).
    rand = jax.random.uniform(k_a, (N, N))
    A = (rand < 0.05).astype(jnp.float32)
    A = jnp.maximum(A, A.T)                                 # symmetric
    A = jnp.maximum(A, jnp.eye(N, dtype=jnp.float32))       # self-loops

    weights = init_gcn_params(k_w, n_features, n_classes, hidden_dimensions)

    logits = gcn_forward(X, A, weights)
    logits = jax.block_until_ready(logits)

    assert logits.shape == (N, n_classes)
    assert bool(jnp.all(jnp.isfinite(logits)))

    # Sanity-check against a pure-JAX f32 reference (bf16 MXU operands -> loose tol).
    ref = gcn_reference(X, A, weights)
    rel_err = float(jnp.max(jnp.abs(logits - ref)) /
                    (jnp.max(jnp.abs(ref)) + 1e-8))
    assert rel_err < 0.1, f"relative error too large: {rel_err}"

    print("KERNEL_OK")
</pallas_src>

<mosaic_0001>
module attributes {stable_mosaic.version = 11 : i64} {
  func.func @_degree_kernel(%arg0: i32, %arg1: i32, %arg2: memref<128x256xi8, #tpu.memory_space<vmem>>, %arg3: memref<128x1xf32, #tpu.memory_space<vmem>>, %arg4: memref<128x1xf32, #tpu.memory_space<vmem>>) attributes {dimension_semantics = [#tpu.dimension_semantics<parallel>, #tpu.dimension_semantics<arbitrary>], iteration_bounds = array<i64: 2, 1>, scalar_prefetch = 0 : i64, scratch_operands = 1 : i64, tpu.core_type = #tpu.core_type<tc>, window_params = [{transform_indices = @transform_0, window_bounds = array<i64: 128, 256>}, {transform_indices = @transform_1, window_bounds = array<i64: 128, 1>}]} {
    %c0_i32 = arith.constant 0 : i32
    %0 = arith.cmpi eq, %arg1, %c0_i32 : i32
    %1 = arith.extui %0 : i1 to i32
    %c0_i32_0 = arith.constant 0 : i32
    %2 = arith.cmpi ne, %1, %c0_i32_0 : i32
    scf.if %2 {
      %cst_8 = arith.constant 0.000000e+00 : f32
      %13 = vector.broadcast %cst_8 : f32 to vector<128x1xf32>
      %c0_9 = arith.constant 0 : index
      %c0_10 = arith.constant 0 : index
      %14 = vector.load %arg4[%c0_9, %c0_10] : memref<128x1xf32, #tpu.memory_space<vmem>>, vector<128x1xf32>
      tpu.vector_store %arg4[%c0_9, %c0_10], %13 {strides = array<i32>} : memref<128x1xf32, #tpu.memory_space<vmem>>, vector<128x1xf32>,
    } else {
    }
    %c0 = arith.constant 0 : index
    %c0_1 = arith.constant 0 : index
    %3 = vector.load %arg4[%c0, %c0_1] : memref<128x1xf32, #tpu.memory_space<vmem>>, vector<128x1xf32>
    %c0_2 = arith.constant 0 : index
    %c0_3 = arith.constant 0 : index
    %4 = vector.load %arg2[%c0_2, %c0_3] : memref<128x256xi8, #tpu.memory_space<vmem>>, vector<128x256xi8>
    %5 = arith.sitofp %4 : vector<128x256xi8> to vector<128x256xf32>
    %cst = arith.constant dense<0.000000e+00> : vector<128xf32>
    %6 = vector.multi_reduction <add>, %5, %cst [1] : vector<128x256xf32> to vector<128xf32>
    %7 = vector.shape_cast %6 : vector<128xf32> to vector<128x1xf32>
    %8 = arith.addf %3, %7 : vector<128x1xf32>
    %c0_4 = arith.constant 0 : index
    %c0_5 = arith.constant 0 : index
    %9 = vector.load %arg4[%c0_4, %c0_5] : memref<128x1xf32, #tpu.memory_space<vmem>>, vector<128x1xf32>
    tpu.vector_store %arg4[%c0_4, %c0_5], %8 {strides = array<i32>} : memref<128x1xf32, #tpu.memory_space<vmem>>, vector<128x1xf32>,
    %c0_i32_6 = arith.constant 0 : i32
    %10 = arith.cmpi eq, %arg1, %c0_i32_6 : i32
    %11 = arith.extui %10 : i1 to i32
    %c0_i32_7 = arith.constant 0 : i32
    %12 = arith.cmpi ne, %11, %c0_i32_7 : i32
    scf.if %12 {
      %c0_8 = arith.constant 0 : index
      %c0_9 = arith.constant 0 : index
      %13 = vector.load %arg4[%c0_8, %c0_9] : memref<128x1xf32, #tpu.memory_space<vmem>>, vector<128x1xf32>
      %cst_10 = arith.constant 0.000000e+00 : f32
      %14 = vector.broadcast %cst_10 : f32 to vector<128x1xf32>
      %15 = arith.cmpf ogt, %13, %14 : vector<128x1xf32>
      %16 = math.rsqrt %13 : vector<128x1xf32>
      %cst_11 = arith.constant 0.000000e+00 : f32
      %17 = vector.broadcast %cst_11 : f32 to vector<128x1xf32>
      %18 = arith.select %15, %16, %17 : vector<128x1xi1>, vector<128x1xf32>
      %c0_12 = arith.constant 0 : index
      %c0_13 = arith.constant 0 : index
      %19 = vector.load %arg3[%c0_12, %c0_13] : memref<128x1xf32, #tpu.memory_space<vmem>>, vector<128x1xf32>
      tpu.vector_store %arg3[%c0_12, %c0_13], %18 {strides = array<i32>} : memref<128x1xf32, #tpu.memory_space<vmem>>, vector<128x1xf32>,
    } else {
    }
    return
  }
  func.func @transform_0(%arg0: i32, %arg1: i32) -> (i32, i32) {
    %c0_i32 = arith.constant 0 : i32
    return %arg0, %arg1 : i32, i32
  }
  func.func @transform_1(%arg0: i32, %arg1: i32) -> (i32, i32) {
    %c0_i32 = arith.constant 0 : i32
    %c0_i32_0 = arith.constant 0 : i32
    return %arg0, %c0_i32 : i32, i32
  }
}

</mosaic_0001>

<bundles_post_ra>
// kernel: tpu_custom_call.1
= control target key start
LH: loop header
LB: loop body
LE: loop exit
PB: predicated region body
PF: predicated region fallthrough
CT: control target
= control target key end

     0   :  { %6 = vsyncpa [#allocation4], 0  ;;  %s910_s0 = inlined_call_operand.hbm [shape: s8[256,256], index: 0, kind: input, shape index: {}]   ;;  %s911_s1 = inlined_call_operand.vmem [shape: f32[256,1], index: 1, kind: output, shape index: {}]  }
   0x1   :  { %8 = vsyncpa [#allocation4 + $0x1], 0  ;;  %s711_s6 = smov 0   ;;  %s713_s7 = smov 0  }
   0x2   :  { %s715_s8 = smov 0   ;;  %s717_s9 = smov 0  }
   0x3   :  { %s719_s10 = smov 0   ;;  %s721_s11 = smov 0  }
   0x4 LB: > { %s509_s12 = sadd.s32 4294967295, %s695_s11   ;;  %s26_s13 = sadd.s32 1, %s691_s10  ;;  %s695_s11 = sphi %s721_s11, %s14_s11   ;;  %s691_s10 = sphi %s719_s10, %s919_s10   ;;  %s687_s9 = sphi %s717_s9, %s918_s9   ;;  %s683_s8 = sphi %s715_s8, %s917_s8   ;;  %s679_s7 = sphi %s713_s7, %s916_s7   ;;  %s675_s6 = sphi %s711_s6, %s915_s6  }
   0x5   : > { %p28_p0 = scmp.ge.s32.totalorder %s26_s13, 2  ;;  %s35_s14 = sadd.s32 1, %s683_s8 }
   0x6   : > { %p42_p1 = scmp.ne.s32.totalorder %s683_s8, %s679_s7  ;;  %p43_p2 = scmp.eq.s32.totalorder %s695_s11, 0 }
   0x7   : > { %s921_s13 = smov (%p28_p0, %s26_s13), 0  ;;  %p48_p4 = scmp.ne.s32.totalorder %s679_s7, %s675_s6 }
   0x8   : > { %p747_p3 = por %p43_p2, %p42_p1  ;;  %s30_s16 = ssub.s32 %s691_s10, %s921_s13 }
   0x9   : > { %p49_p5 = scmp.eq.s32.totalorder %s509_s12, 0  ;;  %p33_p6 = scmp.eq.s32.totalorder %s30_s16, 0 }
   0xa   : > { %p531_p8 = scmp.lt.s32.totalorder %s695_s11, 2  ;;  %s98_s19 = sand.u32 1, %s683_s8  }
   0xb   : > { %p754_p7 = por %p49_p5, %p48_p4  ;;  %s524_s20 = sshll.u32 %s691_s10, 10 }
   0xc   : > { %s760_s18 = scalar_select %p33_p6, %s683_s8, %s35_s14  }
   0xd   : > { %s513_s21 = sshll.u32 %s98_s19, 6  ;;  %s767_s24 = scalar_lea.hbm %s910_s0, %s524_s20 }
   0xe   : > { %s102_s25 = scalar_lea.vmem [#allocation3], %s513_s21  ;;  %p771_p9 = pnand %p531_p8, %p747_p3 }
   0xf   : > { %s112_s26 = sshll.u32 %s102_s25, 4  ;;  %s777_s28 = scalar_lea.sflag [#allocation4], %s98_s19  ;;  %s775_s26 = int_to_ptr.vmem [resolvable:$true] %s112_s26 }
  0x10   : > { %s615_s29 = scalar_lea.hbm %s767_s24, 1024  ;;  %p617_p11 = pneg %p771_p9 }
  0x11   : > { %p616_p10 = scmp.ne.s32.totalorder %s767_s24, %s615_s29  ;;  %s620_s3 = scalar_lea.hbm %s910_s0, 2048 }
  0x12   : > { %p621_p0 = scmp.lt.u32.totalorder %s767_s24, %s910_s0  ;;  %p622_p1 = scmp.lt.u32.totalorder %s620_s3, %s615_s29 }
  0x13   : > { %p618_p12 = pnand %p617_p11, %p616_p10  ;;  %p624_p3 = scmp.lt.u32.totalorder %s615_s29, %s767_s24 }
  0x14   : > { %p623_p2 = por %p622_p1, %p621_p0 }
  0x15   : > { %p619_p13 = pneg %p618_p12 }
  0x16   : > { %p625_p4 = por %p624_p3, %p623_p2 }
  0x18   : > { %p626_p5 = pnand %p625_p4, %p619_p13 }
  0x1a   : > { %629 = shalt.err (!%p626_p5)
}
  0x1b   : > { %s630_s6 = scalar_lea.vmem %s775_s26, 1024  ;;  %s697_s12 = smov [#allocation3]  }
  0x1c   : > { %p631_p6 = scmp.ne.s32.totalorder %s775_s26, %s630_s6  ;;  %s635_s14 = sshll.u32 %s697_s12, 4  ;;  %s636_s14 = int_to_ptr.vmem [resolvable:$false] %s635_s14 }
  0x1d   : > { %s637_s15 = scalar_lea.vmem %s636_s14, 2048  ;;  %p638_p12 = scmp.lt.s32.totalorder %s775_s26, %s636_s14 }
  0x1e   : > { %p633_p8 = pnand %p631_p6, %p617_p11  ;;  %p639_p0 = scmp.lt.s32.totalorder %s637_s15, %s630_s6 }
  0x20   : > { %p634_p10 = pneg %p633_p8  ;;  %p640_p1 = por %p639_p0, %p638_p12 }
  0x22   : > { %p641_p2 = pnand %p640_p1, %p634_p10 }
  0x24   : > { %644 = shalt.err (!%p641_p2)
}
  0x25   : > { %s698_s16 = smov 256   ;;  %s699_s19 = smov 16  }
  0x26   : > { %530 = dma.hbm_to_vmem [thread:$0]  (!%p771_p9), %s767_s24, 1024, %s775_s26, %s777_s28, %s698_s16, %s698_s16, %s699_s19  }
  0x27   : > { %p517_p11 = scmp.ge.s32.totalorder %s695_s11, 1  ;;  %p120_p13 = scmp.lt.s32.totalorder %s695_s11, 3 }
  0x29   : > { %p121_p3 = pnand %p517_p11, %p120_p13 }
  0x2a   : > { %s126_s20 = sand.u32 (!%p121_p3), 1, %s679_s7  }
  0x2b   : > { %124 = sbr.rel (%p121_p3) target bundleno = 252 (0xfc), region = 24  ;;  %s518_s21 = sshll.u32 (!%p121_p3), %s126_s20, 6 }
  0x2c   : > { %s127_s22 = scalar_lea.sflag (!%p121_p3), [#allocation4], %s126_s20  ;;  %s808_s23 = scalar_lea.vmem (!%p121_p3), [#allocation3], %s518_s21 }
  0x32   : > { %670 = dma.done.wait (%p754_p7), %s127_s22, 1024  }
  0x33   : > { %672 = vsyncadd (%p754_p7), %s127_s22, 4294966272  ;;  %vm161_vm0 = vcmask 7168   ;;  %v700_v0 = vmov 0.0   ;;  %v194_v1 = vld [vmem:[%s808_s23] sm:$0xff]  ;;  %v195_v2 = vld [vmem:[%s808_s23 + $0x8] sm:$0xff]  ;;  %s519_s17 = sshll.u32 %s687_s9, 4 }
  0x34   : > { %164 = vst.msk [vmem:[#allocation2 + $0x10] sm:$0xff] %vm161_vm0, %v700_v0  ;;  %162 = vst.msk [vmem:[#allocation2] sm:$0xff] %vm161_vm0, %v700_v0  ;;  %v206_v3 = vunpack.c.2.s8 %v194_v1  ;;  %v207_v4 = vunpack.c.2.s8 %v195_v2  ;;  %v202_v5 = vunpack.c.0.s8 %v194_v1  ;;  %v203_v6 = vunpack.c.0.s8 %v195_v2  ;;  %v196_v11 = vld [vmem:[%s808_s23 + $0x10] sm:$0xff]  ;;  %v197_v12 = vld [vmem:[%s808_s23 + $0x18] sm:$0xff]  ;;  %p152_p7 = scmp.lt.s32.totalorder %s519_s17, 31 }
  0x35   : > { %163 = vst.msk [vmem:[#allocation2 + $0x8] sm:$0xff] %vm161_vm0, %v700_v0  ;;  %165 = vst.msk [vmem:[#allocation2 + $0x18] sm:$0xff] %vm161_vm0, %v700_v0  ;;  %v208_v7 = vunpack.c.3.s8 %v194_v1  ;;  %v209_v8 = vunpack.c.3.s8 %v195_v2  ;;  %v204_v9 = vunpack.c.1.s8 %v194_v1  ;;  %v205_v10 = vunpack.c.1.s8 %v195_v2  ;;  %v198_v33 = vld [vmem:[%s808_s23 + $0x20] sm:$0xff]  ;;  %v199_v38 = vld [vmem:[%s808_s23 + $0x28] sm:$0xff] }
  0x36   : > { %166 = vst.msk [vmem:[#allocation2 + $0x20] sm:$0xff] %vm161_vm0, %v700_v0  ;;  %167 = vst.msk [vmem:[#allocation2 + $0x28] sm:$0xff] %vm161_vm0, %v700_v0  ;;  %v238_v13 = vcvt.s32.f32 %v206_v3  ;;  %v239_v14 = vcvt.s32.f32 %v207_v4  ;;  %v234_v15 = vcvt.s32.f32 %v202_v5  ;;  %v235_v16 = vcvt.s32.f32 %v203_v6  ;;  %v200_v55 = vld [vmem:[%s808_s23 + $0x30] sm:$0xff]  ;;  %v201_v60 = vld [vmem:[%s808_s23 + $0x38] sm:$0xff]  ;;  %s923_s17 = smov (!%p152_p7, %s519_s17), 31 }
  0x37   : > { %168 = vst.msk [vmem:[#allocation2 + $0x30] sm:$0xff] %vm161_vm0, %v700_v0  ;;  %169 = vst.msk [vmem:[#allocation2 + $0x38] sm:$0xff] %vm161_vm0, %v700_v0  ;;  %v240_v17 = vcvt.s32.f32 %v208_v7  ;;  %v241_v18 = vcvt.s32.f32 %v209_v8  ;;  %v236_v19 = vcvt.s32.f32 %v204_v9  ;;  %v237_v20 = vcvt.s32.f32 %v205_v10  ;;  %s520_s9 = sshll.u32 %s923_s17, 3 }
  0x38   : > { %170 = vst.msk [vmem:[#allocation2 + $0x40] sm:$0xff] %vm161_vm0, %v700_v0  ;;  %171 = vst.msk [vmem:[#allocation2 + $0x48] sm:$0xff] %vm161_vm0, %v700_v0  ;;  %v272_v21 = vadd.f32 %v239_v14, %v238_v13  ;;  %v266_v22 = vadd.f32 %v235_v16, %v234_v15  ;;  %v212_v23 = vunpack.c.1.s8 %v196_v11  ;;  %v213_v24 = vunpack.c.1.s8 %v197_v12  ;;  %s852_s26 = scalar_lea.vmem %s911_s1, %s520_s9 }
  0x39   : > { %172 = vst.msk [vmem:[#allocation2 + $0x50] sm:$0xff] %vm161_vm0, %v700_v0  ;;  %173 = vst.msk [vmem:[#allocation2 + $0x58] sm:$0xff] %vm161_vm0, %v700_v0  ;;  %v275_v25 = vadd.f32 %v241_v18, %v240_v17  ;;  %v269_v26 = vadd.f32 %v237_v20, %v236_v19  ;;  %v210_v27 = vunpack.c.0.s8 %v196_v11  ;;  %v211_v28 = vunpack.c.0.s8 %v197_v12 }
  0x3a   : > { %174 = vst.msk [vmem:[#allocation2 + $0x60] sm:$0xff] %vm161_vm0, %v700_v0  ;;  %175 = vst.msk [vmem:[#allocation2 + $0x68] sm:$0xff] %vm161_vm0, %v700_v0  ;;  %273 = vadd.xlane.f32.xlu1 %v272_v21  ;;  %267 = vadd.xlane.f32.xlu0 %v266_v22  ;;  %v244_v29 = vcvt.s32.f32 %v212_v23  ;;  %v245_v30 = vcvt.s32.f32 %v213_v24  ;;  %v216_v31 = vunpack.c.3.s8 %v196_v11  ;;  %v217_v32 = vunpack.c.3.s8 %v197_v12 }
  0x3b   : > { %176 = vst.msk [vmem:[#allocation2 + $0x70] sm:$0xff] %vm161_vm0, %v700_v0  ;;  %177 = vst.msk [vmem:[#allocation2 + $0x78] sm:$0xff] %vm161_vm0, %v700_v0  ;;  %v242_v34 = vcvt.s32.f32 %v210_v27  ;;  %v243_v35 = vcvt.s32.f32 %v211_v28  ;;  %v214_v36 = vunpack.c.2.s8 %v196_v11  ;;  %v215_v37 = vunpack.c.2.s8 %v197_v12 }
  0x3c   : > { %v281_v39 = vadd.f32 %v245_v30, %v244_v29  ;;  %v248_v40 = vcvt.s32.f32 %v216_v31  ;;  %v249_v42 = vcvt.s32.f32 %v217_v32  ;;  %v220_v44 = vunpack.c.1.s8 %v198_v33  ;;  %v181_v31 = vld [vmem:[#allocation2 + $0x18] sm:$0xff]  ;;  %v179_v32 = vld [vmem:[#allocation2 + $0x8] sm:$0xff] }
  0x3d   : > { %v278_v41 = vadd.f32 %v243_v35, %v242_v34  ;;  %v246_v43 = vcvt.s32.f32 %v214_v36  ;;  %v247_v45 = vcvt.s32.f32 %v215_v37  ;;  %v221_v46 = vunpack.c.1.s8 %v199_v38  ;;  %v183_v37 = vld [vmem:[#allocation2 + $0x28] sm:$0xff] }
  0x3e   : > { %276 = vadd.xlane.f32.xlu1 %v275_v25  ;;  %270 = vadd.xlane.f32.xlu0 %v269_v26  ;;  %v218_v47 = vunpack.c.0.s8 %v198_v33  ;;  %v219_v48 = vunpack.c.0.s8 %v199_v38  ;;  %v224_v49 = vunpack.c.3.s8 %v198_v33  ;;  %v225_v50 = vunpack.c.3.s8 %v199_v38  ;;  %v180_v25 = vld [vmem:[#allocation2 + $0x10] sm:$0xff]  ;;  %v178_v26 = vld [vmem:[#allocation2] sm:$0xff] }
  0x3f   : > { %v287_v51 = vadd.f32 %v249_v42, %v248_v40  ;;  %v252_v52 = vcvt.s32.f32 %v220_v44  ;;  %v222_v53 = vunpack.c.2.s8 %v198_v33  ;;  %v223_v54 = vunpack.c.2.s8 %v199_v38  ;;  %v182_v38 = vld [vmem:[#allocation2 + $0x20] sm:$0xff] }
  0x40   : > { %v284_v56 = vadd.f32 %v247_v45, %v246_v43  ;;  %v253_v57 = vcvt.s32.f32 %v221_v46  ;;  %v250_v58 = vcvt.s32.f32 %v218_v47  ;;  %v251_v59 = vcvt.s32.f32 %v219_v48  ;;  %v185_v43 = vld [vmem:[#allocation2 + $0x38] sm:$0xff]  ;;  %v184_v46 = vld [vmem:[#allocation2 + $0x30] sm:$0xff] }
  0x41   : > { %v256_v61 = vcvt.s32.f32 %v224_v49  ;;  %v257_v62 = vcvt.s32.f32 %v225_v50  ;;  %v228_v63 = vunpack.c.1.s8 %v200_v55  ;;  %v254_v0 = vcvt.s32.f32 %v222_v53 }
  0x42   : > { %282 = vadd.xlane.f32.xlu1 %v281_v39  ;;  %279 = vadd.xlane.f32.xlu0 %v278_v41  ;;  %v255_v1 = vcvt.s32.f32 %v223_v54  ;;  %v229_v2 = vunpack.c.1.s8 %v201_v60  ;;  %v293_v3 = vadd.f32 %v253_v57, %v252_v52  ;;  %v290_v4 = vadd.f32 %v251_v59, %v250_v58  ;;  %v186_v54 = vld [vmem:[#allocation2 + $0x40] sm:$0xff]  ;;  %v189_v59 = vld [vmem:[#allocation2 + $0x58] sm:$0xff] }
  0x43   : > { %v226_v5 = vunpack.c.0.s8 %v200_v55  ;;  %v227_v6 = vunpack.c.0.s8 %v201_v60  ;;  %v299_v7 = vadd.f32 %v257_v62, %v256_v61  ;;  %v260_v8 = vcvt.s32.f32 %v228_v63  ;;  %v188_v62 = vld [vmem:[#allocation2 + $0x50] sm:$0xff] }
  0x44   : > { %v296_v9 = vadd.f32 %v255_v1, %v254_v0  ;;  %v261_v10 = vcvt.s32.f32 %v229_v2  ;;  %v232_v11 = vunpack.c.3.s8 %v200_v55  ;;  %v233_v12 = vunpack.c.3.s8 %v201_v60 }
  0x45   : > { %v258_v13 = vcvt.s32.f32 %v226_v5  ;;  %v259_v14 = vcvt.s32.f32 %v227_v6  ;;  %v230_v15 = vunpack.c.2.s8 %v200_v55  ;;  %v231_v16 = vunpack.c.2.s8 %v201_v60 }
  0x46   : > { %288 = vadd.xlane.f32.xlu1 %v287_v51  ;;  %285 = vadd.xlane.f32.xlu0 %v284_v56  ;;  %v305_v17 = vadd.f32 %v261_v10, %v260_v8  ;;  %v264_v18 = vcvt.s32.f32 %v232_v11  ;;  %v265_v20 = vcvt.s32.f32 %v233_v12  ;;  %v187_v51 = vld [vmem:[#allocation2 + $0x48] sm:$0xff] }
  0x47   : > { %v302_v19 = vadd.f32 %v259_v14, %v258_v13  ;;  %v262_v21 = vcvt.s32.f32 %v230_v15  ;;  %v263_v22 = vcvt.s32.f32 %v231_v16  ;;  %v193_v16 = vld [vmem:[#allocation2 + $0x78] sm:$0xff] }
  0x48   : > { %v311_v23 = vadd.f32 %v265_v20, %v264_v18 }
  0x49   : > { %v308_v24 = vadd.f32 %v263_v22, %v262_v21  ;;  %v192_v21 = vld [vmem:[#allocation2 + $0x70] sm:$0xff] }
  0x4a   : > { %294 = vadd.xlane.f32.xlu1 %v293_v3  ;;  %291 = vadd.xlane.f32.xlu0 %v290_v4  ;;  %v191_v4 = vld [vmem:[#allocation2 + $0x68] sm:$0xff] }
  0x4e   : > { %300 = vadd.xlane.f32.xlu1 %v299_v7  ;;  %297 = vadd.xlane.f32.xlu0 %v296_v9  ;;  %v190_v9 = vld [vmem:[#allocation2 + $0x60] sm:$0xff] }
  0x52   : > { %306 = vadd.xlane.f32.xlu1 %v305_v17  ;;  %303 = vadd.xlane.f32.xlu0 %v302_v19 }
  0x56   : > { %312 = vadd.xlane.f32.xlu1 %v311_v23  ;;  %309 = vadd.xlane.f32.xlu0 %v308_v24 }
  0xc7   : > { %v274_v27 = vpop.xlane.xlu1 %273  ;;  %v268_v28 = vpop.xlane.xlu0 %267 }
  0xc8   : > { %v316_v29 = vadd.f32 %v274_v27, %v180_v25  ;;  %v314_v30 = vadd.f32 %v268_v28, %v178_v26 }
  0xca   : > { %333 = vst.msk [vmem:[#allocation2 + $0x10] sm:$0xff] %vm161_vm0, %v316_v29  ;;  %331 = vst.msk [vmem:[#allocation2] sm:$0xff] %vm161_vm0, %v314_v30 }
  0xcb   : > { %v277_v33 = vpop.xlane.xlu1 %276  ;;  %v271_v34 = vpop.xlane.xlu0 %270 }
  0xcc   : > { %v317_v35 = vadd.f32 %v277_v33, %v181_v31  ;;  %v315_v36 = vadd.f32 %v271_v34, %v179_v32 }
  0xce   : > { %334 = vst.msk [vmem:[#allocation2 + $0x18] sm:$0xff] %vm161_vm0, %v317_v35  ;;  %332 = vst.msk [vmem:[#allocation2 + $0x8] sm:$0xff] %vm161_vm0, %v315_v36 }
  0xcf   : > { %v283_v39 = vpop.xlane.xlu1 %282  ;;  %v280_v40 = vpop.xlane.xlu0 %279 }
  0xd0   : > { %v319_v41 = vadd.f32 %v283_v39, %v183_v37  ;;  %v318_v42 = vadd.f32 %v280_v40, %v182_v38 }
  0xd1   : > { %v352_v44 = vld [vmem:[#allocation2 + $0x10] sm:$0xff]  ;;  %v350_v45 = vld [vmem:[#allocation2] sm:$0xff] }
  0xd2   : > { %583 = vrsqrt.f32 %v352_v44  ;;  %336 = vst.msk [vmem:[#allocation2 + $0x28] sm:$0xff] %vm161_vm0, %v319_v41  ;;  %335 = vst.msk [vmem:[#allocation2 + $0x20] sm:$0xff] %vm161_vm0, %v318_v42  ;;  %vm368_vm1 = vcmp.gt.f32.partialorder %v352_v44, 0.0  ;;  %vm366_vm2 = vcmp.gt.f32.partialorder %v350_v45, 0.0 }
  0xd3   : > { %585 = vrsqrt.f32 %v350_v45  ;;  %v289_v47 = vpop.xlane.xlu1 %288  ;;  %v286_v48 = vpop.xlane.xlu0 %285 }
  0xd4   : > { %v321_v49 = vadd.f32 %v289_v47, %v185_v43  ;;  %v320_v50 = vadd.f32 %v286_v48, %v184_v46 }
  0xd5   : > { %v353_v52 = vld [vmem:[#allocation2 + $0x18] sm:$0xff]  ;;  %v351_v53 = vld [vmem:[#allocation2 + $0x8] sm:$0xff] }
  0xd6   : > { %587 = vrsqrt.f32 %v353_v52  ;;  %338 = vst.msk [vmem:[#allocation2 + $0x38] sm:$0xff] %vm161_vm0, %v321_v49  ;;  %337 = vst.msk [vmem:[#allocation2 + $0x30] sm:$0xff] %vm161_vm0, %v320_v50  ;;  %vm369_vm3 = vcmp.gt.f32.partialorder %v353_v52, 0.0  ;;  %vm367_vm4 = vcmp.gt.f32.partialorder %v351_v53, 0.0 }
  0xd7   : > { %589 = vrsqrt.f32 %v351_v53  ;;  %v295_v55 = vpop.xlane.xlu1 %294  ;;  %v292_v56 = vpop.xlane.xlu0 %291 }
  0xd8   : > { %v323_v57 = vadd.f32 %v295_v55, %v187_v51  ;;  %v322_v58 = vadd.f32 %v292_v56, %v186_v54 }
  0xd9   : > { %v355_v60 = vld [vmem:[#allocation2 + $0x28] sm:$0xff]  ;;  %v354_v61 = vld [vmem:[#allocation2 + $0x20] sm:$0xff] }
  0xda   : > { %591 = vrsqrt.f32 %v355_v60  ;;  %340 = vst.msk [vmem:[#allocation2 + $0x48] sm:$0xff] %vm161_vm0, %v323_v57  ;;  %339 = vst.msk [vmem:[#allocation2 + $0x40] sm:$0xff] %vm161_vm0, %v322_v58  ;;  %vm371_vm5 = vcmp.gt.f32.partialorder %v355_v60, 0.0  ;;  %vm370_vm6 = vcmp.gt.f32.partialorder %v354_v61, 0.0 }
  0xdb   : > { %593 = vrsqrt.f32 %v354_v61  ;;  %v301_v63 = vpop.xlane.xlu1 %300  ;;  %v298_v0 = vpop.xlane.xlu0 %297 }
  0xdc   : > { %v584_v1 = vpop.eup %583  ;;  %v325_v2 = vadd.f32 %v301_v63, %v189_v59  ;;  %v324_v3 = vadd.f32 %v298_v0, %v188_v62 }
  0xdd   : > { %v586_v5 = vpop.eup %585  ;;  %v400_v6 = vsel %vm368_vm1, %v584_v1, 0.0  ;;  %v357_v7 = vld [vmem:[#allocation2 + $0x38] sm:$0xff]  ;;  %v356_v8 = vld [vmem:[#allocation2 + $0x30] sm:$0xff] }
  0xde   : > { %416 = vst.msk [vmem:[%s852_s26 + $0x10] sm:$0xff] %vm161_vm0, %v400_v6  ;;  %v398_v10 = vsel %vm366_vm2, %v586_v5, 0.0  ;;  %595 = vrsqrt.f32 %v357_v7  ;;  %342 = vst.msk [vmem:[#allocation2 + $0x58] sm:$0xff] %vm161_vm0, %v325_v2  ;;  %vm373_vm7 = vcmp.gt.f32.partialorder %v357_v7, 0.0  ;;  %vm372_vm8 = vcmp.gt.f32.partialorder %v356_v8, 0.0 }
  0xdf   : > { %341 = vst.msk [vmem:[#allocation2 + $0x50] sm:$0xff] %vm161_vm0, %v324_v3  ;;  %414 = vst.msk [vmem:[%s852_s26] sm:$0xff] %vm161_vm0, %v398_v10  ;;  %597 = vrsqrt.f32 %v356_v8  ;;  %v307_v11 = vpop.xlane.xlu1 %306  ;;  %v304_v12 = vpop.xlane.xlu0 %303 }
  0xe0   : > { %v588_v13 = vpop.eup %587  ;;  %v327_v14 = vadd.f32 %v307_v11, %v191_v4  ;;  %v326_v15 = vadd.f32 %v304_v12, %v190_v9 }
  0xe1   : > { %v590_v17 = vpop.eup %589  ;;  %v401_v18 = vsel %vm369_vm3, %v588_v13, 0.0  ;;  %v359_v19 = vld [vmem:[#allocation2 + $0x48] sm:$0xff]  ;;  %v358_v20 = vld [vmem:[#allocation2 + $0x40] sm:$0xff] }
  0xe2   : > { %417 = vst.msk [vmem:[%s852_s26 + $0x18] sm:$0xff] %vm161_vm0, %v401_v18  ;;  %v399_v22 = vsel %vm367_vm4, %v590_v17, 0.0  ;;  %599 = vrsqrt.f32 %v359_v19  ;;  %344 = vst.msk [vmem:[#allocation2 + $0x68] sm:$0xff] %vm161_vm0, %v327_v14  ;;  %vm375_vm9 = vcmp.gt.f32.partialorder %v359_v19, 0.0  ;;  %vm374_vm10 = vcmp.gt.f32.partialorder %v358_v20, 0.0 }
  0xe3   : > { %343 = vst.msk [vmem:[#allocation2 + $0x60] sm:$0xff] %vm161_vm0, %v326_v15  ;;  %415 = vst.msk [vmem:[%s852_s26 + $0x8] sm:$0xff] %vm161_vm0, %v399_v22  ;;  %601 = vrsqrt.f32 %v358_v20  ;;  %v313_v23 = vpop.xlane.xlu1 %312  ;;  %v310_v24 = vpop.xlane.xlu0 %309 }
  0xe4   : > { %v592_v25 = vpop.eup %591  ;;  %v329_v26 = vadd.f32 %v313_v23, %v193_v16  ;;  %v328_v27 = vadd.f32 %v310_v24, %v192_v21 }
  0xe5   : > { %v594_v28 = vpop.eup %593  ;;  %v403_v29 = vsel %vm371_vm5, %v592_v25, 0.0  ;;  %v361_v30 = vld [vmem:[#allocation2 + $0x58] sm:$0xff] }
  0xe6   : > { %v360_v31 = vld [vmem:[#allocation2 + $0x50] sm:$0xff]  ;;  %419 = vst.msk [vmem:[%s852_s26 + $0x28] sm:$0xff] %vm161_vm0, %v403_v29  ;;  %v402_v32 = vsel %vm370_vm6, %v594_v28, 0.0  ;;  %603 = vrsqrt.f32 %v361_v30  ;;  %346 = vst.msk [vmem:[#allocation2 + $0x78] sm:$0xff] %vm161_vm0, %v329_v26  ;;  %vm377_vm11 = vcmp.gt.f32.partialorder %v361_v30, 0.0 }
  0xe7   : > { %345 = vst.msk [vmem:[#allocation2 + $0x70] sm:$0xff] %vm161_vm0, %v328_v27  ;;  %418 = vst.msk [vmem:[%s852_s26 + $0x20] sm:$0xff] %vm161_vm0, %v402_v32  ;;  %605 = vrsqrt.f32 %v360_v31  ;;  %vm376_vm12 = vcmp.gt.f32.partialorder %v360_v31, 0.0 }
  0xe8   : > { %v596_v33 = vpop.eup %595 }
  0xe9   : > { %v598_v34 = vpop.eup %597  ;;  %v405_v35 = vsel %vm373_vm7, %v596_v33, 0.0  ;;  %v363_v36 = vld [vmem:[#allocation2 + $0x68] sm:$0xff] }
  0xea   : > { %v362_v37 = vld [vmem:[#allocation2 + $0x60] sm:$0xff]  ;;  %421 = vst.msk [vmem:[%s852_s26 + $0x38] sm:$0xff] %vm161_vm0, %v405_v35  ;;  %v404_v38 = vsel %vm372_vm8, %v598_v34, 0.0  ;;  %607 = vrsqrt.f32 %v363_v36  ;;  %vm379_vm13 = vcmp.gt.f32.partialorder %v363_v36, 0.0 }
  0xeb   : > { %420 = vst.msk [vmem:[%s852_s26 + $0x30] sm:$0xff] %vm161_vm0, %v404_v38  ;;  %609 = vrsqrt.f32 %v362_v37  ;;  %vm378_vm14 = vcmp.gt.f32.partialorder %v362_v37, 0.0 }
  0xec   : > { %v600_v39 = vpop.eup %599 }
  0xed   : > { %v602_v40 = vpop.eup %601  ;;  %v407_v41 = vsel %vm375_vm9, %v600_v39, 0.0  ;;  %v365_v42 = vld [vmem:[#allocation2 + $0x78] sm:$0xff] }
  0xee   : > { %v364_v43 = vld [vmem:[#allocation2 + $0x70] sm:$0xff]  ;;  %423 = vst.msk [vmem:[%s852_s26 + $0x48] sm:$0xff] %vm161_vm0, %v407_v41  ;;  %v406_v44 = vsel %vm374_vm10, %v602_v40, 0.0  ;;  %611 = vrsqrt.f32 %v365_v42  ;;  %vm381_vm15 = vcmp.gt.f32.partialorder %v365_v42, 0.0 }
  0xef   : > { %422 = vst.msk [vmem:[%s852_s26 + $0x40] sm:$0xff] %vm161_vm0, %v406_v44  ;;  %613 = vrsqrt.f32 %v364_v43  ;;  %vm380_vm1 = vcmp.gt.f32.partialorder %v364_v43, 0.0 }
  0xf0   : > { %v604_v45 = vpop.eup %603 }
  0xf1   : > { %v606_v46 = vpop.eup %605  ;;  %v409_v47 = vsel %vm377_vm11, %v604_v45, 0.0 }
  0xf2   : > { %425 = vst.msk [vmem:[%s852_s26 + $0x58] sm:$0xff] %vm161_vm0, %v409_v47  ;;  %v408_v48 = vsel %vm376_vm12, %v606_v46, 0.0 }
  0xf3   : > { %424 = vst.msk [vmem:[%s852_s26 + $0x50] sm:$0xff] %vm161_vm0, %v408_v48 }
  0xf4   : > { %v608_v49 = vpop.eup %607 }
  0xf5   : > { %v610_v50 = vpop.eup %609  ;;  %v411_v51 = vsel %vm379_vm13, %v608_v49, 0.0 }
  0xf6   : > { %427 = vst.msk [vmem:[%s852_s26 + $0x68] sm:$0xff] %vm161_vm0, %v411_v51  ;;  %v410_v52 = vsel %vm378_vm14, %v610_v50, 0.0 }
  0xf7   : > { %426 = vst.msk [vmem:[%s852_s26 + $0x60] sm:$0xff] %vm161_vm0, %v410_v52 }
  0xf8   : > { %v612_v53 = vpop.eup %611 }
  0xf9   : > { %v614_v54 = vpop.eup %613  ;;  %v413_v55 = vsel %vm381_vm15, %v612_v53, 0.0 }
  0xfa   : > { %429 = vst.msk [vmem:[%s852_s26 + $0x78] sm:$0xff] %vm161_vm0, %v413_v55  ;;  %v412_v56 = vsel %vm380_vm1, %v614_v54, 0.0 }
  0xfb   : > { %428 = vst.msk [vmem:[%s852_s26 + $0x70] sm:$0xff] %vm161_vm0, %v412_v56 }
  0xfc PF: > { %s14_s11 = sadd.s32 1, %s695_s11   ;;  %s915_s6 = smov %s679_s7 }
  0xfd   : > { %p11_p9 = scmp.ge.s32.totalorder %s14_s11, 4   ;;  %s916_s7 = smov %s683_s8 }
  0xfe   : > { %s917_s8 = smov %s760_s18  ;;  %s918_s9 = smov %s691_s10 }
  0xff   : > { %s919_s10 = smov %s921_s13  ;;  %13 = sbr.rel (!%p11_p9) target bundleno = 4 (0x4), region = 72 }
 0x106   :  { %452 = vsyncpa [#allocation4], 1 }
 0x107   :  { %454 = vsyncpa [#allocation4 + $0x1], 1 }

</bundles_post_ra>
